<compile_context>
chip_gen: v6e
topology: v6e:2x2x1
jax: 0.10.0
libtpu: 0.0.40
codegen_flags: <defaults>
</compile_context>

<pallas_src>
import functools

import jax
import jax.numpy as jnp
from jax.experimental import pallas as pl
from jax.experimental.pallas import tpu as pltpu  # noqa: F401  (kept for the TODOs above)


def dkt_fused_kernel(x_ref, h0_ref, c0_ref,
                     wih_ref, whh_ref, bg_ref,
                     w_head_ref, b_head_ref,
                     dec_ref, hT_ref, cT_ref):
    """Whole DKT forward in a single kernel invocation.

    x_ref      : (T*Bp, H)   time-major flattened input (row = t*Bp + b)
    h0/c0      : (Bp, H)
    wih/whh    : (H, 4H)     transposed LSTM weights, gate order i,f,g,o,
                             g columns pre-scaled by 2 (tanh identity)
    bg         : (1, 4H)     bih + bhh, g slice pre-scaled by 2
    w_head     : (H, S_pad)  folded Linear1*Linear2*Linear3 (lane-padded)
    b_head     : (1, S_pad)  folded head bias (lane-padded)
    dec_ref    : (T*Bp, S_pad) time-major decoded output
    hT/cT      : (Bp, H)     final hidden / cell state
    """
    Bp, H = h0_ref.shape
    TB = x_ref.shape[0]
    T = TB // Bp

    # --- prologue: batched input projection for ALL timesteps (one MXU pass),
    #     with both LSTM biases folded in.
    gx = jnp.dot(x_ref[...], wih_ref[...],
                 preferred_element_type=jnp.float32) + bg_ref[...]   # (T*Bp, 4H)

    whh = whh_ref[...]
    h = h0_ref[...]
    c = c0_ref[...]
    hs = []

    # --- sequential recurrence, fully unrolled at trace time (T is small &
    #     static). Only h @ Whh^T + the gate elementwise math is serial.
    for t in range(T):
        gates = gx[t * Bp:(t + 1) * Bp, :] + jnp.dot(
            h, whh, preferred_element_type=jnp.float32)          # (Bp, 4H)
        # One full-vreg sigmoid EUP pass; the g gate reuses it via
        # tanh(z) = 2*sigmoid(2z) - 1 (its columns were pre-scaled by 2).
        sg = jax.nn.sigmoid(gates)
        i_g = sg[:, 0 * H:1 * H]
        f_g = sg[:, 1 * H:2 * H]
        g_g = 2.0 * sg[:, 2 * H:3 * H] - 1.0
        o_g = sg[:, 3 * H:4 * H]
        c = f_g * c + i_g * g_g
        h = o_g * jnp.tanh(c)
        hs.append(h)                    # stays in vregs; no VMEM scratch store

    hT_ref[...] = h
    cT_ref[...] = c

    # --- epilogue: single folded head matmul over all T*Bp rows, one
    #     lane-dense (T*Bp, S_pad) store.
    h_all = jnp.concatenate(hs, axis=0)                          # (T*Bp, H)
    dec_ref[...] = jnp.dot(h_all, w_head_ref[...],
                           preferred_element_type=jnp.float32) + b_head_ref[...]


def prepare_params(params, hidden_size, num_skills):
    """One-time (outside the hot path) weight preprocessing.

    - transpose LSTM weights to (H, 4H)
    - pre-scale the g-gate (index 2H:3H) rows/slice by 2 for the
      tanh(z) = 2*sigmoid(2z) - 1 identity
    - fold the activation-free 3-layer head into one (H, S_pad) matmul
      (lane-padded to a multiple of 128).
    """
    H, S = hidden_size, num_skills
    S_pad = ((S + 127) // 128) * 128

    g_scale = jnp.ones((4 * H, 1), jnp.float32).at[2 * H:3 * H, :].set(2.0)
    wih_t = (params["Wih"] * g_scale).T                              # (H, 4H)
    whh_t = (params["Whh"] * g_scale).T                              # (H, 4H)
    bg = ((params["bih"] + params["bhh"]) * g_scale[:, 0])[None, :]  # (1, 4H)

    w1t = params["W1"].T                                             # (H, H)
    w2t = params["W2"].T                                             # (H, H)
    w3t = jnp.zeros((H, S_pad), jnp.float32).at[:, :S].set(params["W3"].T)
    b3p = jnp.zeros((1, S_pad), jnp.float32).at[:, :S].set(params["b3"][None, :])

    # Linear3(Linear2(Linear1(h))) == h @ (W1^T W2^T W3^T) + ((b1 W2^T + b2) W3^T + b3)
    w_head = w1t @ w2t @ w3t                                         # (H, S_pad)
    b_head = (params["b1"][None, :] @ w2t + params["b2"][None, :]) @ w3t + b3p

    return {"wih_t": wih_t, "whh_t": whh_t, "bg": bg,
            "w_head": w_head, "b_head": b_head}


@functools.partial(jax.jit, static_argnames=("num_skills",))
def dkt_forward(x, h0, c0, prepped, num_skills):
    """x: (B, T, H) float32 (batch_first, like PyTorch). h0/c0: (1, B, H).

    Returns (decoded (B*T, S), (hT (1,B,H), cT (1,B,H))).
    """
    B, T, H = x.shape
    S = num_skills
    S_pad = prepped["w_head"].shape[1]
    B_pad = ((B + 7) // 8) * 8        # pad batch to a full sublane group

    # Time-major, batch-padded input (row = t*B_pad + b). Padded rows are zero
    # and never reach the caller.
    x_tm = (jnp.zeros((T, B_pad, H), jnp.float32)
            .at[:, :B, :].set(jnp.transpose(x, (1, 0, 2)))
            .reshape(T * B_pad, H))
    h0_p = jnp.zeros((B_pad, H), jnp.float32).at[:B, :].set(h0[0])
    c0_p = jnp.zeros((B_pad, H), jnp.float32).at[:B, :].set(c0[0])

    dec_tm, hT_p, cT_p = pl.pallas_call(
        dkt_fused_kernel,
        out_shape=(
            jax.ShapeDtypeStruct((T * B_pad, S_pad), jnp.float32),
            jax.ShapeDtypeStruct((B_pad, H), jnp.float32),
            jax.ShapeDtypeStruct((B_pad, H), jnp.float32),
        ),
    )(x_tm, h0_p, c0_p,
      prepped["wih_t"], prepped["whh_t"], prepped["bg"],
      prepped["w_head"], prepped["b_head"])

    # Undo lane/batch padding and reorder time-major rows (t*B_pad+b) into
    # PyTorch's batch-major output.view(B*T, H) ordering (b*T+t).
    decoded = (dec_tm.reshape(T, B_pad, S_pad)[:, :B, :S]
               .transpose(1, 0, 2)
               .reshape(B * T, S))
    return decoded, (hT_p[:B][None, ...], cT_p[:B][None, ...])


def dkt_forward_ref(x, h0, c0, params):
    """Pure-JAX reference (lax.scan LSTM, unfolded head) for correctness."""
    B, T, H = x.shape
    wih_t = params["Wih"].T
    whh_t = params["Whh"].T
    b = params["bih"] + params["bhh"]

    def step(carry, x_t):
        h, c = carry
        gates = x_t @ wih_t + h @ whh_t + b
        i_g = jax.nn.sigmoid(gates[:, 0 * H:1 * H])
        f_g = jax.nn.sigmoid(gates[:, 1 * H:2 * H])
        g_g = jnp.tanh(gates[:, 2 * H:3 * H])
        o_g = jax.nn.sigmoid(gates[:, 3 * H:4 * H])
        c_new = f_g * c + i_g * g_g
        h_new = o_g * jnp.tanh(c_new)
        return (h_new, c_new), h_new

    (h_t, c_t), outs = jax.lax.scan(step, (h0[0], c0[0]),
                                    jnp.transpose(x, (1, 0, 2)))
    out = jnp.transpose(outs, (1, 0, 2)).reshape(B * T, H)
    d = out @ params["W1"].T + params["b1"]
    d = d @ params["W2"].T + params["b2"]
    d = d @ params["W3"].T + params["b3"]
    return d, (h_t[None, ...], c_t[None, ...])


def init_params(key, hidden_size, num_skills):
    H, S = hidden_size, num_skills
    ks = jax.random.split(key, 6)
    stdv = 1.0 / (H ** 0.5)       # PyTorch LSTM default init
    initrange = 0.05              # module's init_weights for the Linear layers
    return {
        "Wih": jax.random.uniform(ks[0], (4 * H, H), jnp.float32, -stdv, stdv),
        "Whh": jax.random.uniform(ks[1], (4 * H, H), jnp.float32, -stdv, stdv),
        "bih": jax.random.uniform(ks[2], (4 * H,), jnp.float32, -stdv, stdv),
        "bhh": jax.random.uniform(ks[3], (4 * H,), jnp.float32, -stdv, stdv),
        "W1": jax.random.uniform(ks[4], (H, H), jnp.float32, -initrange, initrange),
        "b1": jnp.zeros((H,), jnp.float32),
        "W2": jax.random.uniform(ks[5], (H, H), jnp.float32, -initrange, initrange),
        "b2": jnp.zeros((H,), jnp.float32),
        "W3": jax.random.uniform(jax.random.fold_in(key, 7), (S, H), jnp.float32,
                                 -initrange, initrange),
        "b3": jnp.zeros((S,), jnp.float32),
    }


if __name__ == "__main__":
    B, T, H, S = 2, 8, 32, 16     # batch, seq, hidden_size, num_skills (nlayers=1)
    key = jax.random.PRNGKey(0)
    k_x, k_p = jax.random.split(key)

    params = init_params(k_p, H, S)
    x = jax.random.normal(k_x, (B, T, H), jnp.float32)   # LSTM input (batch_first)
    h0 = jnp.zeros((1, B, H), jnp.float32)                # init_hidden
    c0 = jnp.zeros((1, B, H), jnp.float32)

    # One-time weight preprocessing, outside the hot path.
    prepped = prepare_params(params, H, S)
    prepped = jax.tree_util.tree_map(jax.block_until_ready, prepped)

    decoded, (hT, cT) = dkt_forward(x, h0, c0, prepped, num_skills=S)
    jax.block_until_ready((decoded, hT, cT))

    ref_dec, (ref_h, ref_c) = dkt_forward_ref(x, h0, c0, params)
    assert decoded.shape == (B * T, S) and hT.shape == (1, B, H)
    assert jnp.allclose(decoded, ref_dec, atol=1e-5, rtol=1e-5)
    assert jnp.allclose(hT, ref_h, atol=1e-5, rtol=1e-5)
    assert jnp.allclose(cT, ref_c, atol=1e-5, rtol=1e-5)

    print("KERNEL_OK")
</pallas_src>

<mosaic_0001>
module attributes {stable_mosaic.version = 11 : i64} {
  func.func @dkt_fused_kernel(%arg0: memref<64x32xf32, #tpu.memory_space<vmem>>, %arg1: memref<8x32xf32, #tpu.memory_space<vmem>>, %arg2: memref<8x32xf32, #tpu.memory_space<vmem>>, %arg3: memref<32x128xf32, #tpu.memory_space<vmem>>, %arg4: memref<32x128xf32, #tpu.memory_space<vmem>>, %arg5: memref<1x128xf32, #tpu.memory_space<vmem>>, %arg6: memref<32x128xf32, #tpu.memory_space<vmem>>, %arg7: memref<1x128xf32, #tpu.memory_space<vmem>>, %arg8: memref<64x128xf32, #tpu.memory_space<vmem>>, %arg9: memref<8x32xf32, #tpu.memory_space<vmem>>, %arg10: memref<8x32xf32, #tpu.memory_space<vmem>>) attributes {dimension_semantics = [], scalar_prefetch = 0 : i64, scratch_operands = 0 : i64, tpu.core_type = #tpu.core_type<tc>} {
    %c0 = arith.constant 0 : index
    %c0_0 = arith.constant 0 : index
    %0 = vector.load %arg0[%c0, %c0_0] : memref<64x32xf32, #tpu.memory_space<vmem>>, vector<64x32xf32>
    %c0_1 = arith.constant 0 : index
    %c0_2 = arith.constant 0 : index
    %1 = vector.load %arg3[%c0_1, %c0_2] : memref<32x128xf32, #tpu.memory_space<vmem>>, vector<32x128xf32>
    %cst = arith.constant dense<0.000000e+00> : vector<64x128xf32>
    %2 = tpu.matmul %0, %1, %cst {dimension_numbers = #tpu.dot_dimension_numbers<[1], [0], [0], [1], [0, 0, 1, 1], [], []>} : vector<64x32xf32>, vector<32x128xf32>, vector<64x128xf32> -> vector<64x128xf32>
    %c0_3 = arith.constant 0 : index
    %c0_4 = arith.constant 0 : index
    %3 = vector.load %arg5[%c0_3, %c0_4] : memref<1x128xf32, #tpu.memory_space<vmem>>, vector<1x128xf32>
    %4 = vector.broadcast %3 : vector<1x128xf32> to vector<64x128xf32>
    %5 = arith.addf %2, %4 : vector<64x128xf32>
    %c0_5 = arith.constant 0 : index
    %c0_6 = arith.constant 0 : index
    %6 = vector.load %arg4[%c0_5, %c0_6] : memref<32x128xf32, #tpu.memory_space<vmem>>, vector<32x128xf32>
    %c0_7 = arith.constant 0 : index
    %c0_8 = arith.constant 0 : index
    %7 = vector.load %arg1[%c0_7, %c0_8] : memref<8x32xf32, #tpu.memory_space<vmem>>, vector<8x32xf32>
    %c0_9 = arith.constant 0 : index
    %c0_10 = arith.constant 0 : index
    %8 = vector.load %arg2[%c0_9, %c0_10] : memref<8x32xf32, #tpu.memory_space<vmem>>, vector<8x32xf32>
    %9 = vector.extract_strided_slice %5 {offsets = [0, 0], sizes = [8, 128], strides = [1, 1]} : vector<64x128xf32> to vector<8x128xf32>
    %cst_11 = arith.constant dense<0.000000e+00> : vector<8x128xf32>
    %10 = tpu.matmul %7, %6, %cst_11 {dimension_numbers = #tpu.dot_dimension_numbers<[1], [0], [0], [1], [0, 0, 1, 1], [], []>} : vector<8x32xf32>, vector<32x128xf32>, vector<8x128xf32> -> vector<8x128xf32>
    %11 = arith.addf %9, %10 : vector<8x128xf32>
    %12 = arith.negf %11 : vector<8x128xf32>
    %13 = math.exp %12 : vector<8x128xf32>
    %cst_12 = arith.constant 1.000000e+00 : f32
    %14 = vector.broadcast %cst_12 : f32 to vector<8x128xf32>
    %15 = arith.addf %14, %13 : vector<8x128xf32>
    %16 = arith.divf %14, %15 : vector<8x128xf32>
    %17 = vector.extract_strided_slice %16 {offsets = [0, 0], sizes = [8, 32], strides = [1, 1]} : vector<8x128xf32> to vector<8x32xf32>
    %18 = vector.extract_strided_slice %16 {offsets = [0, 32], sizes = [8, 32], strides = [1, 1]} : vector<8x128xf32> to vector<8x32xf32>
    %19 = vector.extract_strided_slice %16 {offsets = [0, 64], sizes = [8, 32], strides = [1, 1]} : vector<8x128xf32> to vector<8x32xf32>
    %cst_13 = arith.constant 2.000000e+00 : f32
    %20 = vector.broadcast %cst_13 : f32 to vector<8x32xf32>
    %21 = arith.mulf %20, %19 : vector<8x32xf32>
    %cst_14 = arith.constant 1.000000e+00 : f32
    %22 = vector.broadcast %cst_14 : f32 to vector<8x32xf32>
    %23 = arith.subf %21, %22 : vector<8x32xf32>
    %24 = vector.extract_strided_slice %16 {offsets = [0, 96], sizes = [8, 32], strides = [1, 1]} : vector<8x128xf32> to vector<8x32xf32>
    %25 = arith.mulf %18, %8 : vector<8x32xf32>
    %26 = arith.mulf %17, %23 : vector<8x32xf32>
    %27 = arith.addf %25, %26 : vector<8x32xf32>
    %28 = math.tanh %27 : vector<8x32xf32>
    %29 = arith.mulf %24, %28 : vector<8x32xf32>
    %30 = vector.extract_strided_slice %5 {offsets = [8, 0], sizes = [8, 128], strides = [1, 1]} : vector<64x128xf32> to vector<8x128xf32>
    %cst_15 = arith.constant dense<0.000000e+00> : vector<8x128xf32>
    %31 = tpu.matmul %29, %6, %cst_15 {dimension_numbers = #tpu.dot_dimension_numbers<[1], [0], [0], [1], [0, 0, 1, 1], [], []>} : vector<8x32xf32>, vector<32x128xf32>, vector<8x128xf32> -> vector<8x128xf32>
    %32 = arith.addf %30, %31 : vector<8x128xf32>
    %33 = arith.negf %32 : vector<8x128xf32>
    %34 = math.exp %33 : vector<8x128xf32>
    %cst_16 = arith.constant 1.000000e+00 : f32
    %35 = vector.broadcast %cst_16 : f32 to vector<8x128xf32>
    %36 = arith.addf %35, %34 : vector<8x128xf32>
    %37 = arith.divf %35, %36 : vector<8x128xf32>
    %38 = vector.extract_strided_slice %37 {offsets = [0, 0], sizes = [8, 32], strides = [1, 1]} : vector<8x128xf32> to vector<8x32xf32>
    %39 = vector.extract_strided_slice %37 {offsets = [0, 32], sizes = [8, 32], strides = [1, 1]} : vector<8x128xf32> to vector<8x32xf32>
    %40 = vector.extract_strided_slice %37 {offsets = [0, 64], sizes = [8, 32], strides = [1, 1]} : vector<8x128xf32> to vector<8x32xf32>
    %cst_17 = arith.constant 2.000000e+00 : f32
    %41 = vector.broadcast %cst_17 : f32 to vector<8x32xf32>
    %42 = arith.mulf %41, %40 : vector<8x32xf32>
    %cst_18 = arith.constant 1.000000e+00 : f32
    %43 = vector.broadcast %cst_18 : f32 to vector<8x32xf32>
    %44 = arith.subf %42, %43 : vector<8x32xf32>
    %45 = vector.extract_strided_slice %37 {offsets = [0, 96], sizes = [8, 32], strides = [1, 1]} : vector<8x128xf32> to vector<8x32xf32>
    %46 = arith.mulf %39, %27 : vector<8x32xf32>
    %47 = arith.mulf %38, %44 : vector<8x32xf32>
    %48 = arith.addf %46, %47 : vector<8x32xf32>
    %49 = math.tanh %48 : vector<8x32xf32>
    %50 = arith.mulf %45, %49 : vector<8x32xf32>
    %51 = vector.extract_strided_slice %5 {offsets = [16, 0], sizes = [8, 128], strides = [1, 1]} : vector<64x128xf32> to vector<8x128xf32>
    %cst_19 = arith.constant dense<0.000000e+00> : vector<8x128xf32>
    %52 = tpu.matmul %50, %6, %cst_19 {dimension_numbers = #tpu.dot_dimension_numbers<[1], [0], [0], [1], [0, 0, 1, 1], [], []>} : vector<8x32xf32>, vector<32x128xf32>, vector<8x128xf32> -> vector<8x128xf32>
    %53 = arith.addf %51, %52 : vector<8x128xf32>
    %54 = arith.negf %53 : vector<8x128xf32>
    %55 = math.exp %54 : vector<8x128xf32>
    %cst_20 = arith.constant 1.000000e+00 : f32
    %56 = vector.broadcast %cst_20 : f32 to vector<8x128xf32>
    %57 = arith.addf %56, %55 : vector<8x128xf32>
    %58 = arith.divf %56, %57 : vector<8x128xf32>
    %59 = vector.extract_strided_slice %58 {offsets = [0, 0], sizes = [8, 32], strides = [1, 1]} : vector<8x128xf32> to vector<8x32xf32>
    %60 = vector.extract_strided_slice %58 {offsets = [0, 32], sizes = [8, 32], strides = [1, 1]} : vector<8x128xf32> to vector<8x32xf32>
    %61 = vector.extract_strided_slice %58 {offsets = [0, 64], sizes = [8, 32], strides = [1, 1]} : vector<8x128xf32> to vector<8x32xf32>
    %cst_21 = arith.constant 2.000000e+00 : f32
    %62 = vector.broadcast %cst_21 : f32 to vector<8x32xf32>
    %63 = arith.mulf %62, %61 : vector<8x32xf32>
    %cst_22 = arith.constant 1.000000e+00 : f32
    %64 = vector.broadcast %cst_22 : f32 to vector<8x32xf32>
    %65 = arith.subf %63, %64 : vector<8x32xf32>
    %66 = vector.extract_strided_slice %58 {offsets = [0, 96], sizes = [8, 32], strides = [1, 1]} : vector<8x128xf32> to vector<8x32xf32>
    %67 = arith.mulf %60, %48 : vector<8x32xf32>
    %68 = arith.mulf %59, %65 : vector<8x32xf32>
    %69 = arith.addf %67, %68 : vector<8x32xf32>
    %70 = math.tanh %69 : vector<8x32xf32>
    %71 = arith.mulf %66, %70 : vector<8x32xf32>
    %72 = vector.extract_strided_slice %5 {offsets = [24, 0], sizes = [8, 128], strides = [1, 1]} : vector<64x128xf32> to vector<8x128xf32>
    %cst_23 = arith.constant dense<0.000000e+00> : vector<8x128xf32>
    %73 = tpu.matmul %71, %6, %cst_23 {dimension_numbers = #tpu.dot_dimension_numbers<[1], [0], [0], [1], [0, 0, 1, 1], [], []>} : vector<8x32xf32>, vector<32x128xf32>, vector<8x128xf32> -> vector<8x128xf32>
    %74 = arith.addf %72, %73 : vector<8x128xf32>
    %75 = arith.negf %74 : vector<8x128xf32>
    %76 = math.exp %75 : vector<8x128xf32>
    %cst_24 = arith.constant 1.000000e+00 : f32
    %77 = vector.broadcast %cst_24 : f32 to vector<8x128xf32>
    %78 = arith.addf %77, %76 : vector<8x128xf32>
    %79 = arith.divf %77, %78 : vector<8x128xf32>
    %80 = vector.extract_strided_slice %79 {offsets = [0, 0], sizes = [8, 32], strides = [1, 1]} : vector<8x128xf32> to vector<8x32xf32>
    %81 = vector.extract_strided_slice %79 {offsets = [0, 32], sizes = [8, 32], strides = [1, 1]} : vector<8x128xf32> to vector<8x32xf32>
    %82 = vector.extract_strided_slice %79 {offsets = [0, 64], sizes = [8, 32], strides = [1, 1]} : vector<8x128xf32> to vector<8x32xf32>
    %cst_25 = arith.constant 2.000000e+00 : f32
    %83 = vector.broadcast %cst_25 : f32 to vector<8x32xf32>
    %84 = arith.mulf %83, %82 : vector<8x32xf32>
    %cst_26 = arith.constant 1.000000e+00 : f32
    %85 = vector.broadcast %cst_26 : f32 to vector<8x32xf32>
    %86 = arith.subf %84, %85 : vector<8x32xf32>
    %87 = vector.extract_strided_slice %79 {offsets = [0, 96], sizes = [8, 32], strides = [1, 1]} : vector<8x128xf32> to vector<8x32xf32>
    %88 = arith.mulf %81, %69 : vector<8x32xf32>
    %89 = arith.mulf %80, %86 : vector<8x32xf32>
    %90 = arith.addf %88, %89 : vector<8x32xf32>
    %91 = math.tanh %90 : vector<8x32xf32>
    %92 = arith.mulf %87, %91 : vector<8x32xf32>
    %93 = vector.extract_strided_slice %5 {offsets = [32, 0], sizes = [8, 128], strides = [1, 1]} : vector<64x128xf32> to vector<8x128xf32>
    %cst_27 = arith.constant dense<0.000000e+00> : vector<8x128xf32>
    %94 = tpu.matmul %92, %6, %cst_27 {dimension_numbers = #tpu.dot_dimension_numbers<[1], [0], [0], [1], [0, 0, 1, 1], [], []>} : vector<8x32xf32>, vector<32x128xf32>, vector<8x128xf32> -> vector<8x128xf32>
    %95 = arith.addf %93, %94 : vector<8x128xf32>
    %96 = arith.negf %95 : vector<8x128xf32>
    %97 = math.exp %96 : vector<8x128xf32>
    %cst_28 = arith.constant 1.000000e+00 : f32
    %98 = vector.broadcast %cst_28 : f32 to vector<8x128xf32>
    %99 = arith.addf %98, %97 : vector<8x128xf32>
    %100 = arith.divf %98, %99 : vector<8x128xf32>
    %101 = vector.extract_strided_slice %100 {offsets = [0, 0], sizes = [8, 32], strides = [1, 1]} : vector<8x128xf32> to vector<8x32xf32>
    %102 = vector.extract_strided_slice %100 {offsets = [0, 32], sizes = [8, 32], strides = [1, 1]} : vector<8x128xf32> to vector<8x32xf32>
    %103 = vector.extract_strided_slice %100 {offsets = [0, 64], sizes = [8, 32], strides = [1, 1]} : vector<8x128xf32> to vector<8x32xf32>
    %cst_29 = arith.constant 2.000000e+00 : f32
    %104 = vector.broadcast %cst_29 : f32 to vector<8x32xf32>
    %105 = arith.mulf %104, %103 : vector<8x32xf32>
    %cst_30 = arith.constant 1.000000e+00 : f32
    %106 = vector.broadcast %cst_30 : f32 to vector<8x32xf32>
    %107 = arith.subf %105, %106 : vector<8x32xf32>
    %108 = vector.extract_strided_slice %100 {offsets = [0, 96], sizes = [8, 32], strides = [1, 1]} : vector<8x128xf32> to vector<8x32xf32>
    %109 = arith.mulf %102, %90 : vector<8x32xf32>
    %110 = arith.mulf %101, %107 : vector<8x32xf32>
    %111 = arith.addf %109, %110 : vector<8x32xf32>
    %112 = math.tanh %111 : vector<8x32xf32>
    %113 = arith.mulf %108, %112 : vector<8x32xf32>
    %114 = vector.extract_strided_slice %5 {offsets = [40, 0], sizes = [8, 128], strides = [1, 1]} : vector<64x128xf32> to vector<8x128xf32>
    %cst_31 = arith.constant dense<0.000000e+00> : vector<8x128xf32>
    %115 = tpu.matmul %113, %6, %cst_31 {dimension_numbers = #tpu.dot_dimension_numbers<[1], [0], [0], [1], [0, 0, 1, 1], [], []>} : vector<8x32xf32>, vector<32x128xf32>, vector<8x128xf32> -> vector<8x128xf32>
    %116 = arith.addf %114, %115 : vector<8x128xf32>
    %117 = arith.negf %116 : vector<8x128xf32>
    %118 = math.exp %117 : vector<8x128xf32>
    %cst_32 = arith.constant 1.000000e+00 : f32
    %119 = vector.broadcast %cst_32 : f32 to vector<8x128xf32>
    %120 = arith.addf %119, %118 : vector<8x128xf32>
    %121 = arith.divf %119, %120 : vector<8x128xf32>
    %122 = vector.extract_strided_slice %121 {offsets = [0, 0], sizes = [8, 32], strides = [1, 1]} : vector<8x128xf32> to vector<8x32xf32>
    %123 = vector.extract_strided_slice %121 {offsets = [0, 32], sizes = [8, 32], strides = [1, 1]} : vector<8x128xf32> to vector<8x32xf32>
    %124 = vector.extract_strided_slice %121 {offsets = [0, 64], sizes = [8, 32], strides = [1, 1]} : vector<8x128xf32> to vector<8x32xf32>
    %cst_33 = arith.constant 2.000000e+00 : f32
    %125 = vector.broadcast %cst_33 : f32 to vector<8x32xf32>
    %126 = arith.mulf %125, %124 : vector<8x32xf32>
    %cst_34 = arith.constant 1.000000e+00 : f32
    %127 = vector.broadcast %cst_34 : f32 to vector<8x32xf32>
    %128 = arith.subf %126, %127 : vector<8x32xf32>
    %129 = vector.extract_strided_slice %121 {offsets = [0, 96], sizes = [8, 32], strides = [1, 1]} : vector<8x128xf32> to vector<8x32xf32>
    %130 = arith.mulf %123, %111 : vector<8x32xf32>
    %131 = arith.mulf %122, %128 : vector<8x32xf32>
    %132 = arith.addf %130, %131 : vector<8x32xf32>
    %133 = math.tanh %132 : vector<8x32xf32>
    %134 = arith.mulf %129, %133 : vector<8x32xf32>
    %135 = vector.extract_strided_slice %5 {offsets = [48, 0], sizes = [8, 128], strides = [1, 1]} : vector<64x128xf32> to vector<8x128xf32>
    %cst_35 = arith.constant dense<0.000000e+00> : vector<8x128xf32>
    %136 = tpu.matmul %134, %6, %cst_35 {dimension_numbers = #tpu.dot_dimension_numbers<[1], [0], [0], [1], [0, 0, 1, 1], [], []>} : vector<8x32xf32>, vector<32x128xf32>, vector<8x128xf32> -> vector<8x128xf32>
    %137 = arith.addf %135, %136 : vector<8x128xf32>
    %138 = arith.negf %137 : vector<8x128xf32>
    %139 = math.exp %138 : vector<8x128xf32>
    %cst_36 = arith.constant 1.000000e+00 : f32
    %140 = vector.broadcast %cst_36 : f32 to vector<8x128xf32>
    %141 = arith.addf %140, %139 : vector<8x128xf32>
    %142 = arith.divf %140, %141 : vector<8x128xf32>
    %143 = vector.extract_strided_slice %142 {offsets = [0, 0], sizes = [8, 32], strides = [1, 1]} : vector<8x128xf32> to vector<8x32xf32>
    %144 = vector.extract_strided_slice %142 {offsets = [0, 32], sizes = [8, 32], strides = [1, 1]} : vector<8x128xf32> to vector<8x32xf32>
    %145 = vector.extract_strided_slice %142 {offsets = [0, 64], sizes = [8, 32], strides = [1, 1]} : vector<8x128xf32> to vector<8x32xf32>
    %cst_37 = arith.constant 2.000000e+00 : f32
    %146 = vector.broadcast %cst_37 : f32 to vector<8x32xf32>
    %147 = arith.mulf %146, %145 : vector<8x32xf32>
    %cst_38 = arith.constant 1.000000e+00 : f32
    %148 = vector.broadcast %cst_38 : f32 to vector<8x32xf32>
    %149 = arith.subf %147, %148 : vector<8x32xf32>
    %150 = vector.extract_strided_slice %142 {offsets = [0, 96], sizes = [8, 32], strides = [1, 1]} : vector<8x128xf32> to vector<8x32xf32>
    %151 = arith.mulf %144, %132 : vector<8x32xf32>
    %152 = arith.mulf %143, %149 : vector<8x32xf32>
    %153 = arith.addf %151, %152 : vector<8x32xf32>
    %154 = math.tanh %153 : vector<8x32xf32>
    %155 = arith.mulf %150, %154 : vector<8x32xf32>
    %156 = vector.extract_strided_slice %5 {offsets = [56, 0], sizes = [8, 128], strides = [1, 1]} : vector<64x128xf32> to vector<8x128xf32>
    %cst_39 = arith.constant dense<0.000000e+00> : vector<8x128xf32>
    %157 = tpu.matmul %155, %6, %cst_39 {dimension_numbers = #tpu.dot_dimension_numbers<[1], [0], [0], [1], [0, 0, 1, 1], [], []>} : vector<8x32xf32>, vector<32x128xf32>, vector<8x128xf32> -> vector<8x128xf32>
    %158 = arith.addf %156, %157 : vector<8x128xf32>
    %159 = arith.negf %158 : vector<8x128xf32>
    %160 = math.exp %159 : vector<8x128xf32>
    %cst_40 = arith.constant 1.000000e+00 : f32
    %161 = vector.broadcast %cst_40 : f32 to vector<8x128xf32>
    %162 = arith.addf %161, %160 : vector<8x128xf32>
    %163 = arith.divf %161, %162 : vector<8x128xf32>
    %164 = vector.extract_strided_slice %163 {offsets = [0, 0], sizes = [8, 32], strides = [1, 1]} : vector<8x128xf32> to vector<8x32xf32>
    %165 = vector.extract_strided_slice %163 {offsets = [0, 32], sizes = [8, 32], strides = [1, 1]} : vector<8x128xf32> to vector<8x32xf32>
    %166 = vector.extract_strided_slice %163 {offsets = [0, 64], sizes = [8, 32], strides = [1, 1]} : vector<8x128xf32> to vector<8x32xf32>
    %cst_41 = arith.constant 2.000000e+00 : f32
    %167 = vector.broadcast %cst_41 : f32 to vector<8x32xf32>
    %168 = arith.mulf %167, %166 : vector<8x32xf32>
    %cst_42 = arith.constant 1.000000e+00 : f32
    %169 = vector.broadcast %cst_42 : f32 to vector<8x32xf32>
    %170 = arith.subf %168, %169 : vector<8x32xf32>
    %171 = vector.extract_strided_slice %163 {offsets = [0, 96], sizes = [8, 32], strides = [1, 1]} : vector<8x128xf32> to vector<8x32xf32>
    %172 = arith.mulf %165, %153 : vector<8x32xf32>
    %173 = arith.mulf %164, %170 : vector<8x32xf32>
    %174 = arith.addf %172, %173 : vector<8x32xf32>
    %175 = math.tanh %174 : vector<8x32xf32>
    %176 = arith.mulf %171, %175 : vector<8x32xf32>
    %c0_43 = arith.constant 0 : index
    %c0_44 = arith.constant 0 : index
    %177 = vector.load %arg9[%c0_43, %c0_44] : memref<8x32xf32, #tpu.memory_space<vmem>>, vector<8x32xf32>
    tpu.vector_store %arg9[%c0_43, %c0_44], %176 {strides = array<i32>} : memref<8x32xf32, #tpu.memory_space<vmem>>, vector<8x32xf32>,
    %c0_45 = arith.constant 0 : index
    %c0_46 = arith.constant 0 : index
    %178 = vector.load %arg10[%c0_45, %c0_46] : memref<8x32xf32, #tpu.memory_space<vmem>>, vector<8x32xf32>
    tpu.vector_store %arg10[%c0_45, %c0_46], %174 {strides = array<i32>} : memref<8x32xf32, #tpu.memory_space<vmem>>, vector<8x32xf32>,
    %179 = tpu.concatenate %29, %50, %71, %92, %113, %134, %155, %176 in 0 : vector<8x32xf32>, vector<8x32xf32>, vector<8x32xf32>, vector<8x32xf32>, vector<8x32xf32>, vector<8x32xf32>, vector<8x32xf32>, vector<8x32xf32> -> vector<64x32xf32>
    %c0_47 = arith.constant 0 : index
    %c0_48 = arith.constant 0 : index
    %180 = vector.load %arg6[%c0_47, %c0_48] : memref<32x128xf32, #tpu.memory_space<vmem>>, vector<32x128xf32>
    %cst_49 = arith.constant dense<0.000000e+00> : vector<64x128xf32>
    %181 = tpu.matmul %179, %180, %cst_49 {dimension_numbers = #tpu.dot_dimension_numbers<[1], [0], [0], [1], [0, 0, 1, 1], [], []>} : vector<64x32xf32>, vector<32x128xf32>, vector<64x128xf32> -> vector<64x128xf32>
    %c0_50 = arith.constant 0 : index
    %c0_51 = arith.constant 0 : index
    %182 = vector.load %arg7[%c0_50, %c0_51] : memref<1x128xf32, #tpu.memory_space<vmem>>, vector<1x128xf32>
    %183 = vector.broadcast %182 : vector<1x128xf32> to vector<64x128xf32>
    %184 = arith.addf %181, %183 : vector<64x128xf32>
    %c0_52 = arith.constant 0 : index
    %c0_53 = arith.constant 0 : index
    %185 = vector.load %arg8[%c0_52, %c0_53] : memref<64x128xf32, #tpu.memory_space<vmem>>, vector<64x128xf32>
    tpu.vector_store %arg8[%c0_52, %c0_53], %184 {strides = array<i32>} : memref<64x128xf32, #tpu.memory_space<vmem>>, vector<64x128xf32>,
    return
  }
}

</mosaic_0001>

<bundles_post_ra>
// kernel: dkt_forward.1
= control target key start
LH: loop header
LB: loop body
LE: loop exit
PB: predicated region body
PF: predicated region fallthrough
CT: control target
= control target key end

     0   :  { %vm51_vm0 = vcmask 261120   ;;  %v1440_v8 = vmov 0.0   ;;  %vm1441_vm1 = vmmov 0   ;;  %s1442_s22 = smov 64   ;;  %s1443_s24 = smov 32   ;;  %s1801_s3 = inlined_call_operand.vmem [shape: f32[32,128], index: 3, kind: input, shape index: {}]   ;;  %s1802_s0 = inlined_call_operand.vmem [shape: f32[64,32], index: 0, kind: input, shape index: {}]   ;;  %s1803_s4 = inlined_call_operand.vmem [shape: f32[32,128], index: 4, kind: input, shape index: {}]   ;;  %s1804_s1 = inlined_call_operand.vmem [shape: f32[8,32], index: 1, kind: input, shape index: {}]   ;;  %s1805_s5 = inlined_call_operand.vmem [shape: f32[1,128], index: 5, kind: input, shape index: {}]   ;;  %s1806_s2 = inlined_call_operand.vmem [shape: f32[8,32], index: 2, kind: input, shape index: {}]   ;;  %s1807_s6 = inlined_call_operand.vmem [shape: f32[32,128], index: 6, kind: input, shape index: {}]   ;;  %s1808_s7 = inlined_call_operand.vmem [shape: f32[1,128], index: 7, kind: input, shape index: {}]   ;;  %s1809_s8 = inlined_call_operand.vmem [shape: f32[64,128], index: 8, kind: output, shape index: {0}]   ;;  %s1810_s10 = inlined_call_operand.vmem [shape: f32[8,32], index: 10, kind: output, shape index: {2}]   ;;  %s1811_s9 = inlined_call_operand.vmem [shape: f32[8,32], index: 9, kind: output, shape index: {1}]  }
   0x1   :  { %v43_v0 = vld [vmem:[%s1801_s3 + $0x18] sm:$0xff]  ;;  %v42_v1 = vld [vmem:[%s1801_s3 + $0x10] sm:$0xff]  ;;  %v41_v2 = vld [vmem:[%s1801_s3 + $0x8] sm:$0xff] }
   0x2   :  { %1379 = vmatprep.subr.mxu1 %v43_v0  ;;  %1251 = vmatprep.subr.mxu0 %v43_v0  ;;  %v36_v3 = vld [vmem:[%s1802_s0 + $0x20] sm:$0xff]  ;;  %v37_v5 = vld [vmem:[%s1802_s0 + $0x28] sm:$0xff]  ;;  %v1522_v6 = vld [vmem:[%s1803_s4 + $0x18] sm:$0xff] }
   0x3   :  { %1383 = vmatpush3.msra.mxu1 %v43_v0  ;;  %1252 = vmatpush3.msra.mxu0 %v43_v0  ;;  %v40_v4 = vld [vmem:[%s1801_s3] sm:$0xff]  ;;  %v33_v9 = vld [vmem:[%s1802_s0 + $0x8] sm:$0xff]  ;;  %v38_v10 = vld [vmem:[%s1802_s0 + $0x30] sm:$0xff] }
   0x4   :  { %1380 = vmatprep.subr.mxu1 %v42_v1  ;;  %1253 = vmatprep.subr.mxu0 %v42_v1  ;;  %v32_v7 = vld [vmem:[%s1802_s0] sm:$0xff]  ;;  %v1539_v11 = vld [vmem:[%s1803_s4 + $0x10] sm:$0xff]  ;;  %v39_v12 = vld [vmem:[%s1802_s0 + $0x38] sm:$0xff] }
   0x5   :  { %1384 = vmatpush3.msra.mxu1 %v42_v1  ;;  %1254 = vmatpush3.msra.mxu0 %v42_v1  ;;  %v1551_v13 = vld [vmem:[%s1803_s4 + $0x8] sm:$0xff]  ;;  %v1560_v14 = vld [vmem:[%s1803_s4] sm:$0xff]  ;;  %v34_v59 = vld [vmem:[%s1802_s0 + $0x10] sm:$0xff] }
   0x6   :  { %1381 = vmatprep.subr.mxu1 %v41_v2  ;;  %1255 = vmatprep.subr.mxu0 %v41_v2  ;;  %v185_v15 = vld [vmem:[%s1804_s1] sm:$0xff]  ;;  %v35_v60 = vld [vmem:[%s1802_s0 + $0x18] sm:$0xff] }
   0x7   :  { %1385 = vmatpush3.msra.mxu1 %v41_v2  ;;  %1265 = vmatprep.mubr.msk.f32.mxu1 %vm51_vm0, %v36_v3  ;;  %v1599_v21 = vld [vmem:[%s1805_s5] ss:$0 sm:$0xff] }
   0x8   :  { %1382 = vmatprep.subr.mxu1 %v40_v4  ;;  %1256 = vmatpush3.msra.mxu0 %v41_v2  ;;  %v186_v33 = vld [vmem:[%s1806_s2] sm:$0xff]  ;;  %s1444_s2 = smov 96  }
   0x9   :  { %1386 = vmatpush3.msra.mxu1 %v40_v4  ;;  %1257 = vmatprep.subr.mxu0 %v40_v4 }
   0xa   :  { %1266 = vmatmul.mubr.msk.f32.vlgmr.msra.gmra.mxu1 %vm51_vm0, %v37_v5  ;;  %1271 = vmatprep.subr.mxu1 %v1440_v8 }
   0xb   :  { %1272 = vmatpush3.msra.mxu1 %v1522_v6  ;;  %1258 = vmatpush3.msra.mxu0 %v40_v4 }
   0xc   :  { %1259 = vmatprep.mubr.msk.f32.mxu0 %vm51_vm0, %v32_v7  ;;  %1273 = vmatprep.subr.mxu1 %v1440_v8 }
   0xd   :  { %1260 = vmatmul.mubr.msk.f32.vlgmr.msra.gmra.mxu0 %vm51_vm0, %v33_v9  ;;  %1268 = vmatprep.mubr.msk.f32.mxu1 %vm51_vm0, %v38_v10 }
   0xe   :  { %1274 = vmatpush3.msra.mxu1 %v1539_v11  ;;  %1293 = vmatprep.subr.mxu0 %v1440_v8 }
   0xf   :  { %1269 = vmatmul.mubr.msk.f32.gmra.mxu1 %vm51_vm0, %v39_v12  ;;  %1275 = vmatprep.subr.mxu1 %v1440_v8 }
  0x10   :  { %1276 = vmatpush3.msra.mxu1 %v1551_v13  ;;  %1279 = vmatprep.mubr.msk.f32.mxu1 %vm1441_vm1, %v1440_v8 }
  0x11   :  { %1277 = vmatprep.subr.mxu1 %v1440_v8  ;;  %1294 = vmatpush3.msra.mxu0 %v1522_v6 }
  0x12   :  { %1278 = vmatpush3.msra.mxu1 %v1560_v14  ;;  %1295 = vmatprep.subr.mxu0 %v1440_v8 }
  0x13   :  { %1280 = vmatmul.mubr.msk.f32.vlgmr.msra.gmra.mxu1 %vm51_vm0, %v185_v15  ;;  %1282 = vmatprep.subr.mxu1 %v1440_v8 }
  0x14   :  { %1283 = vmatpush3.msra.mxu1 %v1522_v6  ;;  %1290 = vmatprep.mubr.msk.f32.mxu1 %vm1441_vm1, %v1440_v8 }
  0x15   :  { %1284 = vmatprep.subr.mxu1 %v1440_v8  ;;  %1296 = vmatpush3.msra.mxu0 %v1539_v11 }
  0x16   :  { %1285 = vmatpush3.msra.mxu1 %v1539_v11  ;;  %1297 = vmatprep.subr.mxu0 %v1440_v8 }
  0x17   :  { %1286 = vmatprep.subr.mxu1 %v1440_v8  ;;  %1298 = vmatpush3.msra.mxu0 %v1551_v13 }
  0x18   :  { %1287 = vmatpush3.msra.mxu1 %v1551_v13  ;;  %1299 = vmatprep.subr.mxu0 %v1440_v8 }
  0x19   :  { %1288 = vmatprep.subr.mxu1 %v1440_v8  ;;  %1300 = vmatpush3.msra.mxu0 %v1560_v14 }
  0x1a   :  { %1289 = vmatpush3.msra.mxu1 %v1560_v14  ;;  %1315 = vmatprep.subr.mxu0 %v1440_v8 }
  0x1b   :  { %1304 = vmatprep.subr.mxu1 %v1440_v8  ;;  %1262 = vmatprep.mubr.msk.f32.mxu0 %vm51_vm0, %v34_v59 }
  0x1c   :  { %1263 = vmatmul.mubr.msk.f32.gmra.mxu0 %vm51_vm0, %v35_v60 }
  0x1d   :  { %1301 = vmatprep.mubr.msk.f32.mxu0 %vm1441_vm1, %v1440_v8 }
  0xca   :  { %v1590_v16 = vpop.f32.mrf.mxu1 }
  0xcc   :  { %v1592_v17 = vpop.f32.mrf.mxu1 }
  0xcd   :  { %v1261_v18 = vpop.f32.mrf.mxu0 }
  0xce   :  { %v148_v44 = vadd.f32 %v1261_v18, %v1599_v21 }
  0xcf   :  { %v1594_v19 = vpop.f32.mrf.mxu1  ;;  %v142_v20 = vpop.f32.mrf.mxu0 }
  0xd0   :  { %v143_v23 = vadd.f32 %v1599_v21, %v142_v20 }
  0xd1   :  { %v1601_v22 = vpop.f32.mrf.mxu1 }
  0xd3   :  { %v256_v24 = vpop.f32.mrf.mxu1 }
  0xd4   :  { %v260_v25 = vadd.f32 %v256_v24, %v143_v23 }
  0xd5   :  { %v1281_v26 = vpop.f32.mrf.mxu1 }
  0xd6   :  { %v1155_v27 = vmul.f32 -1.442695, %v260_v25 }
  0xd8   :  { %1392 = vpow2.f32 %v1155_v27 }
  0xdc   :  { %v1264_v1 = vpop.f32.mrf.mxu0 }
  0xde   :  { %v152_v2 = vpop.f32.mrf.mxu0 }
  0xdf   :  { %v153_v3 = vadd.f32 %v1599_v21, %v152_v2 }
  0xe5   :  { %v1393_v28 = vpop.eup %1392 }
  0xe6   :  { %v264_v29 = vadd.f32 1.0, %v1393_v28 }
  0xe8   :  { %1394 = vrcp.f32 %v264_v29 }
  0xf5   :  { %v1395_v30 = vpop.eup %1394 }
  0xf6   :  { %v267_v31 = vmul.f32 2.0, %v1395_v30 }
  0xf8   :  { %v1156_v32 = vadd.f32 -1.0, %v267_v31 }
  0xfa   :  { %275 = vrot.lane.b32.xlu0 %v1156_v32, %s1442_s22  ;;  %v158_v32 = vadd.f32 %v1264_v1, %v1599_v21 }
  0xfe   :  { %270 = vrot.lane.b32.xlu0 %v186_v33, %s1443_s24 }
 0x16c   :  { %v276_v34 = vpop.permute.xlu0 %275 }
 0x16d   :  { %v278_v35 = vmul.f32 %v1395_v30, %v276_v34 }
 0x16f   :  { %280 = vrot.lane.b32.xlu1 %v278_v35, %s1443_s24 }
 0x170   :  { %v271_v36 = vpop.permute.xlu0 %270 }
 0x171   :  { %v273_v37 = vmul.f32 %v1395_v30, %v271_v36 }
 0x1e1   :  { %v281_v38 = vpop.permute.xlu1 %280 }
 0x1e2   :  { %v283_v39 = vadd.f32 %v281_v38, %v273_v37 }
 0x1e4   :  { %1396 = vtanh.f32 %v283_v39 }
 0x1f1   :  { %v1397_v40 = vpop.eup %1396 }
 0x1f2   :  { %286 = vrot.lane.b32.xlu1 %v1397_v40, %s1442_s22 }
 0x264   :  { %v287_v41 = vpop.permute.xlu1 %286 }
 0x265   :  { %v289_v42 = vmul.f32 %v1395_v30, %v287_v41 }
 0x267   :  { %291 = vrot.lane.b32.xlu0 %v289_v42, %s1443_s24 }
 0x2d9   :  { %v1612_v43 = vpop.permute.xlu0 %291 }
 0x2da   :  { %1291 = vmatmul.mubr.msk.f32.vlgmr.msra.gmra.mxu1 %vm51_vm0, %v1612_v43 }
 0x2db   :  { %1305 = vmatpush3.msra.mxu1 %v1522_v6  ;;  %1312 = vmatprep.mubr.msk.f32.mxu1 %vm1441_vm1, %v1440_v8 }
 0x2dc   :  { %1306 = vmatprep.subr.mxu1 %v1440_v8 }
 0x2dd   :  { %1307 = vmatpush3.msra.mxu1 %v1539_v11 }
 0x2de   :  { %1308 = vmatprep.subr.mxu1 %v1440_v8 }
 0x2df   :  { %1309 = vmatpush3.msra.mxu1 %v1551_v13 }
 0x2e0   :  { %1310 = vmatprep.subr.mxu1 %v1440_v8 }
 0x2e1   :  { %1311 = vmatpush3.msra.mxu1 %v1560_v14 }
 0x2e2   :  { %1326 = vmatprep.subr.mxu1 %v1440_v8 }
 0x39a   :  { %v361_v45 = vpop.f32.mrf.mxu1 }
 0x39b   :  { %v365_v46 = vadd.f32 %v361_v45, %v148_v44 }
 0x39c   :  { %v1292_v47 = vpop.f32.mrf.mxu1 }
 0x39d   :  { %v1158_v48 = vmul.f32 -1.442695, %v365_v46 }
 0x39f   :  { %1398 = vpow2.f32 %v1158_v48 }
 0x3ac   :  { %v1399_v49 = vpop.eup %1398 }
 0x3ad   :  { %v369_v50 = vadd.f32 1.0, %v1399_v49 }
 0x3af   :  { %1400 = vrcp.f32 %v369_v50 }
 0x3bc   :  { %v1401_v51 = vpop.eup %1400 }
 0x3bd   :  { %v372_v52 = vmul.f32 2.0, %v1401_v51  ;;  %v374_v56 = vmul.f32 %v1401_v51, %v283_v39 }
 0x3bf   :  { %v1159_v53 = vadd.f32 -1.0, %v372_v52  ;;  %v163_v52 = vadd.f32 %v1599_v21, %v1592_v17 }
 0x3c1   :  { %376 = vrot.lane.b32.xlu1 %v1159_v53, %s1442_s22 }
 0x433   :  { %v377_v54 = vpop.permute.xlu1 %376 }
 0x434   :  { %v379_v55 = vmul.f32 %v1401_v51, %v377_v54 }
 0x436   :  { %381 = vrot.lane.b32.xlu0 %v379_v55, %s1443_s24 }
 0x4a8   :  { %v382_v57 = vpop.permute.xlu0 %381 }
 0x4a9   :  { %v384_v58 = vadd.f32 %v382_v57, %v374_v56 }
 0x4ab   :  { %1402 = vtanh.f32 %v384_v58 }
 0x4b8   :  { %v1403_v61 = vpop.eup %1402 }
 0x4b9   :  { %387 = vrot.lane.b32.xlu1 %v1403_v61, %s1442_s22 }
 0x52b   :  { %v388_v62 = vpop.permute.xlu1 %387 }
 0x52c   :  { %v390_v63 = vmul.f32 %v1401_v51, %v388_v62 }
 0x52e   :  { %392 = vrot.lane.b32.xlu0 %v390_v63, %s1443_s24 }
 0x5a0   :  { %v1641_v0 = vpop.permute.xlu0 %392 }
 0x5a1   :  { %1302 = vmatmul.mubr.msk.f32.vlgmr.msra.gmra.mxu0 %vm51_vm0, %v1641_v0 }
 0x5a2   :  { %1316 = vmatpush3.msra.mxu0 %v1522_v6  ;;  %1323 = vmatprep.mubr.msk.f32.mxu0 %vm1441_vm1, %v1440_v8 }
 0x5a3   :  { %1317 = vmatprep.subr.mxu0 %v1440_v8 }
 0x5a4   :  { %1318 = vmatpush3.msra.mxu0 %v1539_v11 }
 0x5a5   :  { %1319 = vmatprep.subr.mxu0 %v1440_v8 }
 0x5a6   :  { %1320 = vmatpush3.msra.mxu0 %v1551_v13 }
 0x5a7   :  { %1321 = vmatprep.subr.mxu0 %v1440_v8 }
 0x5a8   :  { %1322 = vmatpush3.msra.mxu0 %v1560_v14 }
 0x5a9   :  { %1337 = vmatprep.subr.mxu0 %v1440_v8 }
 0x661   :  { %v462_v4 = vpop.f32.mrf.mxu0 }
 0x662   :  { %v466_v5 = vadd.f32 %v462_v4, %v153_v3 }
 0x663   :  { %v1303_v7 = vpop.f32.mrf.mxu0 }
 0x664   :  { %v1161_v9 = vmul.f32 -1.442695, %v466_v5 }
 0x666   :  { %1404 = vpow2.f32 %v1161_v9  ;;  %v168_v9 = vadd.f32 %v1590_v16, %v1599_v21 }
 0x673   :  { %v1405_v10 = vpop.eup %1404 }
 0x674   :  { %v470_v12 = vadd.f32 1.0, %v1405_v10 }
 0x676   :  { %1406 = vrcp.f32 %v470_v12 }
 0x683   :  { %v1407_v15 = vpop.eup %1406 }
 0x684   :  { %v473_v18 = vmul.f32 2.0, %v1407_v15  ;;  %v475_v25 = vmul.f32 %v1407_v15, %v384_v58 }
 0x686   :  { %v1162_v20 = vadd.f32 -1.0, %v473_v18 }
 0x688   :  { %477 = vrot.lane.b32.xlu1 %v1162_v20, %s1442_s22 }
 0x6fa   :  { %v478_v23 = vpop.permute.xlu1 %477 }
 0x6fb   :  { %v480_v24 = vmul.f32 %v1407_v15, %v478_v23 }
 0x6fd   :  { %482 = vrot.lane.b32.xlu0 %v480_v24, %s1443_s24 }
 0x76f   :  { %v483_v26 = vpop.permute.xlu0 %482 }
 0x770   :  { %v485_v27 = vadd.f32 %v483_v26, %v475_v25  ;;  %v1010_v26 = vld [vmem:[%s1807_s6 + $0x18] sm:$0xff] }
 0x772   :  { %1408 = vtanh.f32 %v485_v27 }
 0x77f   :  { %v1409_v28 = vpop.eup %1408 }
 0x780   :  { %488 = vrot.lane.b32.xlu1 %v1409_v28, %s1442_s22 }
 0x7f2   :  { %v489_v29 = vpop.permute.xlu1 %488 }
 0x7f3   :  { %v491_v30 = vmul.f32 %v1407_v15, %v489_v29 }
 0x7f5   :  { %493 = vrot.lane.b32.xlu0 %v491_v30, %s1443_s24 }
 0x867   :  { %v1660_v31 = vpop.permute.xlu0 %493 }
 0x868   :  { %1313 = vmatmul.mubr.msk.f32.vlgmr.msra.gmra.mxu1 %vm51_vm0, %v1660_v31 }
 0x869   :  { %1327 = vmatpush3.msra.mxu1 %v1522_v6  ;;  %1334 = vmatprep.mubr.msk.f32.mxu1 %vm1441_vm1, %v1440_v8 }
 0x86a   :  { %1328 = vmatprep.subr.mxu1 %v1440_v8 }
 0x86b   :  { %1329 = vmatpush3.msra.mxu1 %v1539_v11 }
 0x86c   :  { %1330 = vmatprep.subr.mxu1 %v1440_v8 }
 0x86d   :  { %1331 = vmatpush3.msra.mxu1 %v1551_v13 }
 0x86e   :  { %1332 = vmatprep.subr.mxu1 %v1440_v8 }
 0x86f   :  { %1333 = vmatpush3.msra.mxu1 %v1560_v14 }
 0x870   :  { %1348 = vmatprep.subr.mxu1 %v1440_v8 }
 0x928   :  { %v563_v33 = vpop.f32.mrf.mxu1 }
 0x929   :  { %v567_v34 = vadd.f32 %v563_v33, %v158_v32  ;;  %v1009_v32 = vld [vmem:[%s1807_s6 + $0x10] sm:$0xff]  ;;  %v1008_v33 = vld [vmem:[%s1807_s6 + $0x8] sm:$0xff] }
 0x92a   :  { %v1314_v35 = vpop.f32.mrf.mxu1 }
 0x92b   :  { %v1164_v36 = vmul.f32 -1.442695, %v567_v34  ;;  %v1007_v34 = vld [vmem:[%s1807_s6] sm:$0xff] }
 0x92d   :  { %1410 = vpow2.f32 %v1164_v36 }
 0x93a   :  { %v1411_v37 = vpop.eup %1410 }
 0x93b   :  { %v571_v38 = vadd.f32 1.0, %v1411_v37 }
 0x93d   :  { %1412 = vrcp.f32 %v571_v38 }
 0x94a   :  { %v1413_v39 = vpop.eup %1412 }
 0x94b   :  { %v574_v40 = vmul.f32 2.0, %v1413_v39  ;;  %v576_v45 = vmul.f32 %v1413_v39, %v485_v27 }
 0x94d   :  { %v1165_v41 = vadd.f32 -1.0, %v574_v40 }
 0x94f   :  { %578 = vrot.lane.b32.xlu1 %v1165_v41, %s1442_s22 }
 0x9c1   :  { %v579_v42 = vpop.permute.xlu1 %578 }
 0x9c2   :  { %v581_v44 = vmul.f32 %v1413_v39, %v579_v42 }
 0x9c4   :  { %583 = vrot.lane.b32.xlu0 %v581_v44, %s1443_s24 }
 0xa36   :  { %v584_v46 = vpop.permute.xlu0 %583 }
 0xa37   :  { %v586_v47 = vadd.f32 %v584_v46, %v576_v45 }
 0xa39   :  { %1414 = vtanh.f32 %v586_v47 }
 0xa46   :  { %v1415_v48 = vpop.eup %1414 }
 0xa47   :  { %589 = vrot.lane.b32.xlu1 %v1415_v48, %s1442_s22 }
 0xab9   :  { %v590_v49 = vpop.permute.xlu1 %589 }
 0xaba   :  { %v592_v50 = vmul.f32 %v1413_v39, %v590_v49 }
 0xabc   :  { %594 = vrot.lane.b32.xlu0 %v592_v50, %s1443_s24 }
 0xb2e   :  { %v1679_v51 = vpop.permute.xlu0 %594 }
 0xb2f   :  { %1324 = vmatmul.mubr.msk.f32.vlgmr.msra.gmra.mxu0 %vm51_vm0, %v1679_v51 }
 0xb30   :  { %1338 = vmatpush3.msra.mxu0 %v1522_v6  ;;  %1345 = vmatprep.mubr.msk.f32.mxu0 %vm1441_vm1, %v1440_v8 }
 0xb31   :  { %1339 = vmatprep.subr.mxu0 %v1440_v8 }
 0xb32   :  { %1340 = vmatpush3.msra.mxu0 %v1539_v11 }
 0xb33   :  { %1341 = vmatprep.subr.mxu0 %v1440_v8 }
 0xb34   :  { %1342 = vmatpush3.msra.mxu0 %v1551_v13 }
 0xb35   :  { %1343 = vmatprep.subr.mxu0 %v1440_v8 }
 0xb36   :  { %1344 = vmatpush3.msra.mxu0 %v1560_v14 }
 0xb37   :  { %1359 = vmatprep.subr.mxu0 %v1010_v26 }
 0xbef   :  { %v664_v53 = vpop.f32.mrf.mxu0 }
 0xbf0   :  { %v668_v54 = vadd.f32 %v664_v53, %v163_v52 }
 0xbf1   :  { %v1325_v55 = vpop.f32.mrf.mxu0 }
 0xbf2   :  { %v1167_v56 = vmul.f32 -1.442695, %v668_v54 }
 0xbf4   :  { %1416 = vpow2.f32 %v1167_v56 }
 0xc01   :  { %v1417_v57 = vpop.eup %1416 }
 0xc02   :  { %v672_v58 = vadd.f32 1.0, %v1417_v57 }
 0xc04   :  { %1418 = vrcp.f32 %v672_v58 }
 0xc11   :  { %v1419_v59 = vpop.eup %1418 }
 0xc12   :  { %v675_v60 = vmul.f32 2.0, %v1419_v59  ;;  %v677_v1 = vmul.f32 %v1419_v59, %v586_v47 }
 0xc14   :  { %v1168_v61 = vadd.f32 -1.0, %v675_v60 }
 0xc16   :  { %679 = vrot.lane.b32.xlu1 %v1168_v61, %s1442_s22 }
 0xc88   :  { %v680_v62 = vpop.permute.xlu1 %679 }
 0xc89   :  { %v682_v63 = vmul.f32 %v1419_v59, %v680_v62 }
 0xc8b   :  { %684 = vrot.lane.b32.xlu0 %v682_v63, %s1443_s24 }
 0xcfd   :  { %v685_v2 = vpop.permute.xlu0 %684 }
 0xcfe   :  { %v687_v17 = vadd.f32 %v685_v2, %v677_v1  ;;  %v178_v1 = vadd.f32 %v1594_v19, %v1599_v21 }
 0xd00   :  { %1420 = vtanh.f32 %v687_v17 }
 0xd0d   :  { %v1421_v3 = vpop.eup %1420 }
 0xd0e   :  { %690 = vrot.lane.b32.xlu1 %v1421_v3, %s1442_s22 }
 0xd80   :  { %v691_v4 = vpop.permute.xlu1 %690 }
 0xd81   :  { %v693_v5 = vmul.f32 %v1419_v59, %v691_v4 }
 0xd83   :  { %695 = vrot.lane.b32.xlu0 %v693_v5, %s1443_s24 }
 0xdf5   :  { %v696_v7 = vpop.permute.xlu0 %695 }
 0xdf6   :  { %1335 = vmatmul.mubr.msk.f32.vlgmr.msra.gmra.mxu1 %vm51_vm0, %v696_v7 }
 0xdf7   :  { %1349 = vmatpush3.msra.mxu1 %v1522_v6  ;;  %1356 = vmatprep.mubr.msk.f32.mxu1 %vm1441_vm1, %v1440_v8 }
 0xdf8   :  { %1350 = vmatprep.subr.mxu1 %v1440_v8 }
 0xdf9   :  { %1351 = vmatpush3.msra.mxu1 %v1539_v11 }
 0xdfa   :  { %1352 = vmatprep.subr.mxu1 %v1440_v8 }
 0xdfb   :  { %1353 = vmatpush3.msra.mxu1 %v1551_v13 }
 0xdfc   :  { %1354 = vmatprep.subr.mxu1 %v1440_v8 }
 0xdfd   :  { %1355 = vmatpush3.msra.mxu1 %v1560_v14 }
 0xeb6   :  { %v765_v10 = vpop.f32.mrf.mxu1 }
 0xeb7   :  { %v769_v6 = vadd.f32 %v765_v10, %v168_v9 }
 0xeb8   :  { %v1336_v12 = vpop.f32.mrf.mxu1 }
 0xeb9   :  { %v1170_v15 = vmul.f32 -1.442695, %v769_v6 }
 0xebb   :  { %1422 = vpow2.f32 %v1170_v15 }
 0xec8   :  { %v1423_v18 = vpop.eup %1422 }
 0xec9   :  { %v773_v20 = vadd.f32 1.0, %v1423_v18 }
 0xecb   :  { %1424 = vrcp.f32 %v773_v20 }
 0xed8   :  { %v1425_v11 = vpop.eup %1424 }
 0xed9   :  { %v776_v23 = vmul.f32 2.0, %v1425_v11  ;;  %v778_v14 = vmul.f32 %v1425_v11, %v687_v17 }
 0xedb   :  { %v1171_v24 = vadd.f32 -1.0, %v776_v23 }
 0xedd   :  { %780 = vrot.lane.b32.xlu1 %v1171_v24, %s1442_s22 }
 0xf4f   :  { %v781_v13 = vpop.permute.xlu1 %780 }
 0xf50   :  { %v783_v8 = vmul.f32 %v1425_v11, %v781_v13 }
 0xf52   :  { %785 = vrot.lane.b32.xlu0 %v783_v8, %s1443_s24 }
 0xfc4   :  { %v786_v25 = vpop.permute.xlu0 %785 }
 0xfc5   :  { %v1712_v16 = vadd.f32 %v786_v25, %v778_v14 }
 0xfc7   :  { %1426 = vtanh.f32 %v1712_v16 }
 0xfd4   :  { %v1427_v27 = vpop.eup %1426 }
 0xfd5   :  { %791 = vrot.lane.b32.xlu1 %v1427_v27, %s1442_s22 }
0x1047   :  { %v792_v28 = vpop.permute.xlu1 %791 }
0x1048   :  { %v794_v29 = vmul.f32 %v1425_v11, %v792_v28 }
0x104a   :  { %796 = vrot.lane.b32.xlu0 %v794_v29, %s1443_s24 }
0x10bc   :  { %v797_v30 = vpop.permute.xlu0 %796 }
0x10bd   :  { %1346 = vmatmul.mubr.msk.f32.vlgmr.msra.gmra.mxu0 %vm51_vm0, %v797_v30 }
0x10be   :  { %1360 = vmatpush3.msra.mxu0 %v1010_v26  ;;  %1367 = vmatprep.mubr.msk.f32.mxu0 %vm51_vm0, %v1612_v43  ;;  %v173_v43 = vadd.f32 %v1599_v21, %v1601_v22 }
0x10bf   :  { %1361 = vmatprep.subr.mxu0 %v1009_v32 }
0x10c0   :  { %1362 = vmatpush3.msra.mxu0 %v1009_v32 }
0x10c1   :  { %1363 = vmatprep.subr.mxu0 %v1008_v33 }
0x10c2   :  { %1364 = vmatpush3.msra.mxu0 %v1008_v33 }
0x10c3   :  { %1365 = vmatprep.subr.mxu0 %v1007_v34 }
0x10c4   :  { %1366 = vmatpush3.msra.mxu0 %v1007_v34 }
0x10c5   :  { %1368 = vmatmul.mubr.msk.f32.vlgmr.msra.gmra.mxu0 %vm51_vm0, %v1641_v0  ;;  %v1745_v0 = vld [vmem:[%s1808_s7] ss:$0 sm:$0xff] }
0x10c6   :  { %1370 = vmatprep.mubr.msk.f32.mxu0 %vm51_vm0, %v1660_v31 }
0x10c9   :  { %1371 = vmatmul.mubr.msk.f32.gmra.mxu0 %vm51_vm0, %v1679_v51 }
0x10ca   :  { %1373 = vmatprep.mubr.msk.f32.mxu0 %vm51_vm0, %v696_v7 }
0x10cd   :  { %1374 = vmatmul.mubr.msk.f32.gmra.mxu0 %vm51_vm0, %v797_v30 }
0x117d   :  { %v866_v35 = vpop.f32.mrf.mxu0 }
0x117e   :  { %v870_v36 = vadd.f32 %v866_v35, %v173_v43 }
0x117f   :  { %v1347_v37 = vpop.f32.mrf.mxu0 }
0x1180   :  { %v1173_v38 = vmul.f32 -1.442695, %v870_v36 }
0x1182   :  { %1428 = vpow2.f32 %v1173_v38 }
0x1185   :  { %v1369_v31 = vpop.f32.mrf.mxu0 }
0x1186   :  { %v1092_v39 = vadd.f32 %v1369_v31, %v1745_v0 }
0x1187   :  { %v1086_v40 = vpop.f32.mrf.mxu0 }
0x1188   :  { %1126 = vst [vmem:[%s1809_s8 + $0x8] sm:$0xff] %v1092_v39  ;;  %v1087_v22 = vadd.f32 %v1745_v0, %v1086_v40 }
0x1189   :  { %v1372_v41 = vpop.f32.mrf.mxu0 }
0x118a   :  { %1125 = vst [vmem:[%s1809_s8] sm:$0xff] %v1087_v22  ;;  %v1102_v42 = vadd.f32 %v1372_v41, %v1745_v0 }
0x118b   :  { %v1096_v44 = vpop.f32.mrf.mxu0 }
0x118c   :  { %1128 = vst [vmem:[%s1809_s8 + $0x18] sm:$0xff] %v1102_v42  ;;  %v1097_v45 = vadd.f32 %v1745_v0, %v1096_v44 }
0x118d   :  { %v1375_v46 = vpop.f32.mrf.mxu0 }
0x118e   :  { %1127 = vst [vmem:[%s1809_s8 + $0x10] sm:$0xff] %v1097_v45  ;;  %v1112_v47 = vadd.f32 %v1375_v46, %v1745_v0 }
0x118f   :  { %v1429_v48 = vpop.eup %1428  ;;  %v1106_v49 = vpop.f32.mrf.mxu0 }
0x1190   :  { %v874_v50 = vadd.f32 1.0, %v1429_v48  ;;  %1130 = vst [vmem:[%s1809_s8 + $0x28] sm:$0xff] %v1112_v47  ;;  %v1107_v51 = vadd.f32 %v1745_v0, %v1106_v49 }
0x1192   :  { %1430 = vrcp.f32 %v874_v50  ;;  %1129 = vst [vmem:[%s1809_s8 + $0x20] sm:$0xff] %v1107_v51 }
0x119f   :  { %v1431_v52 = vpop.eup %1430 }
0x11a0   :  { %v877_v53 = vmul.f32 2.0, %v1431_v52  ;;  %v879_v57 = vmul.f32 %v1431_v52, %v1712_v16 }
0x11a2   :  { %v1174_v54 = vadd.f32 -1.0, %v877_v53 }
0x11a4   :  { %881 = vrot.lane.b32.xlu1 %v1174_v54, %s1442_s22 }
0x1216   :  { %v882_v55 = vpop.permute.xlu1 %881 }
0x1217   :  { %v884_v56 = vmul.f32 %v1431_v52, %v882_v55 }
0x1219   :  { %886 = vrot.lane.b32.xlu0 %v884_v56, %s1443_s24 }
0x128b   :  { %v887_v58 = vpop.permute.xlu0 %886 }
0x128c   :  { %v889_v59 = vadd.f32 %v887_v58, %v879_v57 }
0x128e   :  { %1432 = vtanh.f32 %v889_v59 }
0x129b   :  { %v1433_v60 = vpop.eup %1432 }
0x129c   :  { %892 = vrot.lane.b32.xlu1 %v1433_v60, %s1442_s22 }
0x130e   :  { %v893_v61 = vpop.permute.xlu1 %892 }
0x130f   :  { %v895_v62 = vmul.f32 %v1431_v52, %v893_v61 }
0x1311   :  { %897 = vrot.lane.b32.xlu0 %v895_v62, %s1443_s24 }
0x1383   :  { %v898_v63 = vpop.permute.xlu0 %897 }
0x1384   :  { %1357 = vmatmul.mubr.msk.f32.vlgmr.msra.gmra.mxu1 %vm51_vm0, %v898_v63  ;;  %1376 = vmatprep.mubr.msk.f32.mxu0 %vm51_vm0, %v898_v63 }
0x1444   :  { %v967_v2 = vpop.f32.mrf.mxu1 }
0x1445   :  { %v971_v17 = vadd.f32 %v967_v2, %v178_v1 }
0x1446   :  { %v1358_v3 = vpop.f32.mrf.mxu1 }
0x1447   :  { %v1176_v4 = vmul.f32 -1.442695, %v971_v17 }
0x1449   :  { %1434 = vpow2.f32 %v1176_v4 }
0x1456   :  { %v1435_v5 = vpop.eup %1434 }
0x1457   :  { %v975_v7 = vadd.f32 1.0, %v1435_v5 }
0x1459   :  { %1436 = vrcp.f32 %v975_v7 }
0x1466   :  { %v1437_v9 = vpop.eup %1436 }
0x1467   :  { %v978_v10 = vmul.f32 2.0, %v1437_v9  ;;  %v980_v18 = vmul.f32 %v1437_v9, %v889_v59 }
0x1469   :  { %v1177_v6 = vadd.f32 -1.0, %v978_v10 }
0x146b   :  { %982 = vrot.lane.b32.xlu1 %v1177_v6, %s1442_s22 }
0x14dd   :  { %v983_v12 = vpop.permute.xlu1 %982 }
0x14de   :  { %v985_v15 = vmul.f32 %v1437_v9, %v983_v12 }
0x14e0   :  { %987 = vrot.lane.b32.xlu0 %v985_v15, %s1443_s24 }
0x1552   :  { %v988_v20 = vpop.permute.xlu0 %987 }
0x1553   :  { %v990_v19 = vadd.f32 %v988_v20, %v980_v18 }
0x1555   :  { %1438 = vtanh.f32 %v990_v19 }
0x1562   :  { %v1439_v21 = vpop.eup %1438 }
0x1563   :  { %993 = vrot.lane.b32.xlu1 %v1439_v21, %s1442_s22 }
0x1567   :  { %1003 = vrot.lane.b32.xlu1 %v990_v19, %s1444_s2 }
0x15d5   :  { %v994_v11 = vpop.permute.xlu1 %993 }
0x15d6   :  { %v996_v23 = vmul.f32 %v1437_v9, %v994_v11 }
0x15d8   :  { %998 = vrot.lane.b32.xlu0 %v996_v23, %s1443_s24 }
0x15d9   :  { %v1004_v24 = vpop.permute.xlu1 %1003 }
0x15da   :  { %1006 = vst.msk [vmem:[%s1810_s10] sm:$0xff] %vm51_vm0, %v1004_v24 }
0x164a   :  { %v999_v13 = vpop.permute.xlu0 %998 }
0x164b   :  { %1001 = vst.msk [vmem:[%s1811_s9] sm:$0xff] %vm51_vm0, %v999_v13  ;;  %1377 = vmatmul.mubr.msk.f32.gmra.mxu0 %vm51_vm0, %v999_v13 }
0x170b   :  { %v1378_v8 = vpop.f32.mrf.mxu0 }
0x170c   :  { %v1122_v14 = vadd.f32 %v1378_v8, %v1745_v0 }
0x170d   :  { %v1116_v25 = vpop.f32.mrf.mxu0 }
0x170e   :  { %1132 = vst [vmem:[%s1809_s8 + $0x38] sm:$0xff] %v1122_v14  ;;  %v1117_v16 = vadd.f32 %v1745_v0, %v1116_v25 }
0x1710   :  { %1131 = vst [vmem:[%s1809_s8 + $0x30] sm:$0xff] %v1117_v16 }

</bundles_post_ra>
